<compile_context>
chip_gen: v7x
topology: tpu7x:2x2x1
jax: 0.10.0
libtpu: 0.0.40
codegen_flags: <defaults>
</compile_context>

<pallas_src>
import math

import jax
import jax.numpy as jnp
from jax.experimental import pallas as pl
from jax.experimental.pallas import tpu as pltpu


# ~1 MiB per pipelined block; with double-buffered x / pe / out that is <= ~6-8 MiB of VMEM,
# comfortably inside every generation's scoped default (v5e 16 MiB, v6e 32 MiB, v7x 32 MiB scoped).
_BLOCK_BYTES = 1 << 20
# Below this many bytes of x, a single whole-array block is used (pipelining gains nothing).
_SMALL_BYTES = 256 << 10


def make_sinusoidal_pe(max_len: int, embed_dim: int) -> jnp.ndarray:
    """Sinusoidal positional table identical to the PyTorch __init__.  (max_len, embed_dim) f32."""
    position = jnp.arange(0, max_len, dtype=jnp.float32)[:, None]
    div_term = jnp.exp(
        jnp.arange(0, embed_dim, 2, dtype=jnp.float32) * (-math.log(10000.0) / embed_dim)
    )
    angles = position * div_term
    pe = jnp.zeros((max_len, embed_dim), dtype=jnp.float32)
    pe = pe.at[:, 0::2].set(jnp.sin(angles))
    pe = pe.at[:, 1::2].set(jnp.cos(angles[:, : embed_dim // 2]))
    return pe


def _add_pe_kernel(x_ref, pe_ref, o_ref):
    # Pure VPU elementwise add.  pe stays float32 (like the PyTorch buffer); the mixed-dtype add
    # promotes to f32 and the result is cast back to x's dtype on store.
    o_ref[...] = (x_ref[...] + pe_ref[...]).astype(o_ref.dtype)


def _make_whole_pe_kernel(seq_len: int):
    # pe_ref holds the full (max_len, E) table in VMEM; statically slice the rows we need and
    # broadcast over batch.  This avoids any per-call slice/cast of pe in the wrapper.
    def kernel(x_ref, pe_ref, o_ref):
        o_ref[...] = (x_ref[...] + pe_ref[:seq_len, :]).astype(o_ref.dtype)

    return kernel


def _choose_seq_tile(S: int, E: int, itemsize: int) -> int:
    """Largest sublane-granular seq tile whose per-buffer block is ~<= _BLOCK_BYTES."""
    elem_bytes = max(itemsize, 4)  # the pe block is float32
    rows = max(8, (_BLOCK_BYTES // (E * elem_bytes)) // 8 * 8)
    if rows >= S:
        return S
    for ts in range(rows, 7, -8):  # prefer an exact divisor of S: no clipped edge block
        if S % ts == 0:
            return ts
    return rows


def _plan_flat(B: int, S: int, E: int, max_len: int, itemsize: int):
    """Pick (lane_width, row_tile) for the flattened lane-dense path, or None if infeasible.

    Requirements: lane_width is a multiple of 128 dividing both S*E (so a batch item is a whole
    number of rows) and max_len*E (so pe_full reshapes with no copy); row_tile is a multiple of 8
    dividing the per-batch row count (so no x block straddles a batch boundary and the modular pe
    index_map is exact)."""
    L = S * E
    if L % 128 != 0:
        return None
    elem_bytes = max(itemsize, 4)
    best = None
    for k in range(1, (min(L, 2048) // 128) + 1):
        C = 128 * k
        if L % C or (max_len * E) % C:
            continue
        P = L // C  # rows per batch item == pe broadcast period, in rows
        max_rows = max(8, (_BLOCK_BYTES // (C * elem_bytes)) // 8 * 8)
        tr = 0
        for cand in range(8, min(P, max_rows) + 1, 8):
            if P % cand == 0:
                tr = cand
        if tr:
            best = (C, tr)  # keep the widest workable lane width
    return best


def _tiled_3d(x, pe_full, seq_tile):
    """Typical path (E % 128 == 0): seq-tiled grid, pe block reused across the inner batch loop."""
    B, S, E = x.shape
    ts = seq_tile if seq_tile is not None else _choose_seq_tile(S, E, jnp.dtype(x.dtype).itemsize)
    ts = max(1, min(ts, S))
    num_s = pl.cdiv(S, ts)
    return pl.pallas_call(
        _add_pe_kernel,
        out_shape=jax.ShapeDtypeStruct((B, S, E), x.dtype),
        grid=(num_s, B),
        in_specs=[
            pl.BlockSpec((1, ts, E), lambda s, b: (b, s, 0)),
            # full, unsliced pe table: index_map only touches rows < S; block is reused (no re-DMA)
            # across the inner batch loop, so pe HBM traffic is S*E*4 bytes total.
            pl.BlockSpec((ts, E), lambda s, b: (s, 0)),
        ],
        out_specs=pl.BlockSpec((1, ts, E), lambda s, b: (b, s, 0)),
        compiler_params=pltpu.CompilerParams(
            # num_s is the outer axis so v7x's Megacore splits the (usually larger) seq axis
            # even when B is 1 or odd; v5e/v6e are single-TC and ignore this.
            dimension_semantics=("parallel", "parallel"),
        ),
    )(x, pe_full)


def _flat_lane_dense(x, pe_full, lane: int, row_tile: int):
    """E not lane-aligned: reshape to (rows, lane) with lane % 128 == 0 so stores are unmasked."""
    B, S, E = x.shape
    max_len = pe_full.shape[0]
    per_batch_rows = (S * E) // lane
    period_blocks = per_batch_rows // row_tile
    total_rows = B * per_batch_rows
    num_r = total_rows // row_tile

    xf = x.reshape(total_rows, lane)                      # row-major reshape: free, no copy
    pef = pe_full.reshape((max_len * E) // lane, lane)    # free, no copy (lane | max_len*E)

    if period_blocks == 1:
        pe_map = lambda r: (0, 0)
    else:
        pe_map = lambda r: (r % period_blocks, 0)         # broadcast over batch via modular index

    out = pl.pallas_call(
        _add_pe_kernel,
        out_shape=jax.ShapeDtypeStruct((total_rows, lane), x.dtype),
        grid=(num_r,),
        in_specs=[
            pl.BlockSpec((row_tile, lane), lambda r: (r, 0)),
            pl.BlockSpec((row_tile, lane), pe_map),
        ],
        out_specs=pl.BlockSpec((row_tile, lane), lambda r: (r, 0)),
        compiler_params=pltpu.CompilerParams(dimension_semantics=("parallel",)),
    )(xf, pef)
    return out.reshape(B, S, E)


def _whole_block(x, pe_full):
    """Tiny-input path: one block holding x, out and the full pe table (all full-extent dims)."""
    B, S, E = x.shape
    max_len = pe_full.shape[0]
    return pl.pallas_call(
        _make_whole_pe_kernel(S),
        out_shape=jax.ShapeDtypeStruct((B, S, E), x.dtype),
        grid=(1,),
        in_specs=[
            pl.BlockSpec((B, S, E), lambda i: (0, 0, 0)),
            pl.BlockSpec((max_len, E), lambda i: (0, 0)),
        ],
        out_specs=pl.BlockSpec((B, S, E), lambda i: (0, 0, 0)),
        compiler_params=pltpu.CompilerParams(dimension_semantics=("arbitrary",)),
    )(x, pe_full)


def positional_encoding(x: jnp.ndarray, pe_full: jnp.ndarray, *, seq_tile: int | None = None):
    """x: (B, S, E); pe_full: (max_len, E) float32.  Returns x + pe[:S] broadcast over batch.

    Output dtype follows x.dtype; the add itself runs in float32 inside the kernel."""
    B, S, E = x.shape
    max_len = pe_full.shape[0]
    if S > max_len:
        raise ValueError(f"seq_len {S} exceeds max_len {max_len}")
    itemsize = jnp.dtype(x.dtype).itemsize

    if E % 128 == 0:
        return _tiled_3d(x, pe_full, seq_tile)

    # E not lane-aligned: prefer a lane-dense flattened layout over masked partial stores.
    x_bytes = B * S * E * itemsize
    pe_bytes = max_len * E * 4
    plan = _plan_flat(B, S, E, max_len, itemsize)

    if plan is not None and x_bytes > _SMALL_BYTES:
        return _flat_lane_dense(x, pe_full, *plan)
    if 2 * (2 * x_bytes + pe_bytes) <= (12 << 20):  # x + out + full pe table, with buffering slack
        return _whole_block(x, pe_full)
    if plan is not None:
        return _flat_lane_dense(x, pe_full, *plan)
    # TODO(synk): rare case (E not lane-aligned, S*E not 128-divisible, too large for one block):
    # fall back to the seq-tiled path, which is correct but uses masked (lane-sparse) stores.
    return _tiled_3d(x, pe_full, seq_tile)


if __name__ == "__main__":
    key = jax.random.PRNGKey(0)
    k1, k2, k3, k4 = jax.random.split(key, 4)
    MAX_LEN = 512

    # --- Check 1: module-spec demo shape (B, S, E) = (2, 8, 32), f32 -> tiny whole-block path ---
    B, S, E = 2, 8, 32
    x = jax.random.normal(k1, (B, S, E), dtype=jnp.float32)
    pe_full = make_sinusoidal_pe(MAX_LEN, E)
    out = jax.block_until_ready(positional_encoding(x, pe_full))
    ref = x + pe_full[None, :S, :]
    assert out.shape == x.shape and out.dtype == x.dtype
    assert jnp.allclose(out, ref, atol=1e-6, rtol=1e-6)

    # --- Check 2: lane-aligned E (multiple of 128), forced multi-tile seq grid (3-D tiled path) ---
    B2, S2, E2 = 2, 64, 128
    x2 = jax.random.normal(k2, (B2, S2, E2), dtype=jnp.float32)
    pe_full2 = make_sinusoidal_pe(MAX_LEN, E2)
    out2 = jax.block_until_ready(positional_encoding(x2, pe_full2, seq_tile=16))
    ref2 = x2 + pe_full2[None, :S2, :]
    assert out2.shape == x2.shape and out2.dtype == x2.dtype
    assert jnp.allclose(out2, ref2, atol=1e-6, rtol=1e-6)

    # --- Check 3: bf16 input, auto tile size; add runs in f32 in-kernel, output cast to bf16 ---
    x3 = jax.random.normal(k3, (B2, S2, E2), dtype=jnp.float32).astype(jnp.bfloat16)
    out3 = jax.block_until_ready(positional_encoding(x3, pe_full2))
    ref3 = (x3.astype(jnp.float32) + pe_full2[None, :S2, :]).astype(jnp.bfloat16)
    assert out3.dtype == jnp.bfloat16
    assert jnp.allclose(out3.astype(jnp.float32), ref3.astype(jnp.float32), atol=2e-2, rtol=2e-2)

    # --- Check 4: E not a multiple of 128, large enough to take the lane-dense flattened path ---
    B4, S4, E4 = 2, 512, 96
    x4 = jax.random.normal(k4, (B4, S4, E4), dtype=jnp.float32)
    pe_full4 = make_sinusoidal_pe(MAX_LEN, E4)
    out4 = jax.block_until_ready(positional_encoding(x4, pe_full4))
    ref4 = x4 + pe_full4[None, :S4, :]
    assert out4.shape == x4.shape and out4.dtype == x4.dtype
    assert jnp.allclose(out4, ref4, atol=1e-6, rtol=1e-6)

    print("KERNEL_OK")
</pallas_src>

<mosaic_0001>
module attributes {stable_mosaic.version = 11 : i64} {
  func.func @kernel(%arg0: i32, %arg1: memref<2x8x32xf32, #tpu.memory_space<vmem>>, %arg2: memref<512x32xf32, #tpu.memory_space<vmem>>, %arg3: memref<2x8x32xf32, #tpu.memory_space<vmem>>) attributes {dimension_semantics = [#tpu.dimension_semantics<arbitrary>], iteration_bounds = array<i64: 1>, scalar_prefetch = 0 : i64, scratch_operands = 0 : i64, tpu.core_type = #tpu.core_type<tc>, window_params = [{pipeline_mode = #tpu.pipeline_mode<synchronous>, transform_indices = @transform_0, window_bounds = array<i64: 2, 8, 32>}, {pipeline_mode = #tpu.pipeline_mode<synchronous>, transform_indices = @transform_1, window_bounds = array<i64: 512, 32>}, {pipeline_mode = #tpu.pipeline_mode<synchronous>, transform_indices = @transform_2, window_bounds = array<i64: 2, 8, 32>}]} {
    %c0 = arith.constant 0 : index
    %c0_0 = arith.constant 0 : index
    %c0_1 = arith.constant 0 : index
    %0 = vector.load %arg1[%c0, %c0_0, %c0_1] : memref<2x8x32xf32, #tpu.memory_space<vmem>>, vector<2x8x32xf32>
    %c0_2 = arith.constant 0 : index
    %c0_3 = arith.constant 0 : index
    %1 = vector.load %arg2[%c0_2, %c0_3] : memref<512x32xf32, #tpu.memory_space<vmem>>, vector<8x32xf32>
    %2 = vector.shape_cast %1 : vector<8x32xf32> to vector<1x8x32xf32>
    %3 = vector.broadcast %2 : vector<1x8x32xf32> to vector<2x8x32xf32>
    %4 = arith.addf %0, %3 : vector<2x8x32xf32>
    %c0_4 = arith.constant 0 : index
    %c0_5 = arith.constant 0 : index
    %c0_6 = arith.constant 0 : index
    %5 = vector.load %arg3[%c0_4, %c0_5, %c0_6] : memref<2x8x32xf32, #tpu.memory_space<vmem>>, vector<2x8x32xf32>
    tpu.vector_store %arg3[%c0_4, %c0_5, %c0_6], %4 {strides = array<i32>} : memref<2x8x32xf32, #tpu.memory_space<vmem>>, vector<2x8x32xf32>,
    return
  }
  func.func @transform_0(%arg0: i32) -> (i32, i32, i32) {
    %c0_i32 = arith.constant 0 : i32
    %c0_i32_0 = arith.constant 0 : i32
    %c0_i32_1 = arith.constant 0 : i32
    %c0_i32_2 = arith.constant 0 : i32
    return %c0_i32, %c0_i32_0, %c0_i32_1 : i32, i32, i32
  }
  func.func @transform_1(%arg0: i32) -> (i32, i32) {
    %c0_i32 = arith.constant 0 : i32
    %c0_i32_0 = arith.constant 0 : i32
    %c0_i32_1 = arith.constant 0 : i32
    return %c0_i32, %c0_i32_0 : i32, i32
  }
  func.func @transform_2(%arg0: i32) -> (i32, i32, i32) {
    %c0_i32 = arith.constant 0 : i32
    %c0_i32_0 = arith.constant 0 : i32
    %c0_i32_1 = arith.constant 0 : i32
    %c0_i32_2 = arith.constant 0 : i32
    return %c0_i32, %c0_i32_0, %c0_i32_1 : i32, i32, i32
  }
}

</mosaic_0001>

<bundles_post_ra>
// kernel: tpu_custom_call.1
= control target key start
LH: loop header
LB: loop body
LE: loop exit
PB: predicated region body
PF: predicated region fallthrough
CT: control target
= control target key end

     0   :  { %vm17_vm0 = vcmask 261120   ;;  %s102_s0 = inlined_call_operand.vmem [shape: f32[2,8,32], index: 0, kind: input, shape index: {}]   ;;  %s103_s1 = inlined_call_operand.vmem [shape: f32[512,32], index: 1, kind: input, shape index: {}]   ;;  %s104_s2 = inlined_call_operand.hbm [shape: f32[2,8,32], index: 2, kind: output, shape index: {}]  }
   0x1   :  { %v12_v0 = vld [vmem:[%s102_s0] sm:$0xff]  ;;  %v13_v2 = vld [vmem:[%s102_s0 + $0x8] sm:$0xff] }
   0x2   :  { %v14_v1 = vld [vmem:[%s103_s1] sm:$0xff] }
   0x3   :  { %v15_v3 = vadd.f32 %v14_v1, %v12_v0  ;;  %v16_v4 = vadd.f32 %v14_v1, %v13_v2 }
   0x4   :  { %7 = vsyncpa [#allocation3], 0  ;;  %s63_s15 = smov [#allocation2]  }
   0x5   :  { %s25_s16 = sshll.u32 %s63_s15, 4  ;;  %18 = vst.msk [vmem:[#allocation2] sm:$0xff] %vm17_vm0, %v15_v3  ;;  %19 = vst.msk [vmem:[#allocation2 + $0x8] sm:$0xff] %vm17_vm0, %v16_v4  ;;  %s26_s16 = int_to_ptr.vmem [resolvable:$true] %s25_s16 }
   0x6   :  { %s39_s17 = scalar_lea.vmem %s26_s16, 256  ;;  %p44_p1 = scmp.lt.s32.totalorder %s26_s16, %s26_s16 }
   0x7   :  { %p40_p0 = scmp.ne.s32.totalorder %s26_s16, %s39_s17  ;;  %p45_p2 = scmp.lt.s32.totalorder %s39_s17, %s39_s17 }
   0x9   :  { %p46_p3 = por %p45_p2, %p44_p1 }
   0xb   :  { %p47_p4 = pnand %p46_p3, %p40_p0 }
   0xd   :  { %50 = shalt.err (!%p47_p4)
}
   0xe   :  { %s51_s19 = scalar_lea.hbm %s104_s2, 256 }
   0xf   :  { %p52_p5 = scmp.ne.s32.totalorder %s104_s2, %s51_s19  ;;  %p55_p6 = scmp.lt.u32.totalorder %s51_s19, %s104_s2 }
  0x11   :  { %p57_p7 = pnand %p55_p6, %p52_p5 }
  0x13   :  { %60 = shalt.err (!%p57_p7)
}
  0x14   :  { %s64_s23 = smov 128   ;;  %s65_s24 = smov 8  }
  0x15   :  { %31 = dma.vmem_to_hbm [thread:$0]  %s26_s16, 256, %s104_s2, [#allocation3], %s64_s23, %s64_s23, %s65_s24  }
  0x16   :  { %61 = dma.done.wait [#allocation3], 256  }
  0x17   :  { %62 = vsyncadd [#allocation3], 4294967040 }
  0x18   :  { %35 = vsyncpa [#allocation3], 1 }

</bundles_post_ra>
